<compile_context>
chip_gen: v7x
topology: tpu7x:2x2x1
jax: 0.10.0
libtpu: 0.0.40
codegen_flags: <defaults>
</compile_context>

<pallas_src>
import jax
import jax.numpy as jnp
from jax.experimental import pallas as pl
from jax.experimental.pallas import tpu as pltpu


LANES = 128
MAX_TILE_ROWS = 2048  # (2048, 128) f32 = 1 MiB per tile


def _mse_loss_nan_kernel(inp_ref, tgt_ref, out_ref):
    # Elementwise: diff = target - input, NaN -> 0
    diff = tgt_ref[...] - inp_ref[...]
    out_ref[...] = jnp.where(jnp.isnan(diff), jnp.zeros_like(diff), diff)


def _min_sublanes(dtype):
    # f32 -> 8, bf16/f16 -> 16, int8/fp8 -> 32
    itemsize = jnp.dtype(dtype).itemsize
    return max(8, 32 // max(itemsize, 1))


def mse_loss_nan(inp, tgt, reduction="sum"):
    # `reduction` intentionally ignored to match the original forward.
    assert inp.shape == tgt.shape, "input/target must have the same shape"
    orig_shape = inp.shape
    orig_dtype = inp.dtype

    n = inp.size
    pad = (-n) % LANES  # only non-zero when n is not a multiple of 128

    if pad == 0:
        # Common case: no padding copies, just a reshape (view-level in XLA).
        inp2d = inp.reshape(-1, LANES)
        tgt2d = tgt.reshape(-1, LANES)
    else:
        # Rare tail-padding path (e.g. odd element counts).
        inp2d = jnp.pad(inp.reshape(-1), (0, pad)).reshape(-1, LANES)
        tgt2d = jnp.pad(tgt.reshape(-1), (0, pad)).reshape(-1, LANES)

    rows = inp2d.shape[0]

    # Dtype-aware sublane granularity; cap the tile to the actual array so
    # small inputs don't allocate oversized VMEM buffers.
    min_sub = _min_sublanes(orig_dtype)
    rows_rounded = ((rows + min_sub - 1) // min_sub) * min_sub
    block_rows = min(MAX_TILE_ROWS, rows_rounded)

    grid = (pl.cdiv(rows, block_rows),)
    spec = pl.BlockSpec((block_rows, LANES), lambda i: (i, 0))

    out2d = pl.pallas_call(
        _mse_loss_nan_kernel,
        out_shape=jax.ShapeDtypeStruct((rows, LANES), orig_dtype),
        grid=grid,
        in_specs=[spec, spec],
        out_specs=spec,
        compiler_params=pltpu.CompilerParams(
            dimension_semantics=("parallel",)
        ),
    )(inp2d, tgt2d)

    if pad == 0:
        return out2d.reshape(orig_shape)
    return out2d.reshape(-1)[:n].reshape(orig_shape)


if __name__ == "__main__":
    key = jax.random.PRNGKey(0)
    k1, k2, k3 = jax.random.split(key, 3)

    # Small NCHW inputs consistent with an image-like loss.
    shape = (2, 4, 16, 16)
    x = jax.random.normal(k1, shape, dtype=jnp.float32)
    y = jax.random.normal(k2, shape, dtype=jnp.float32)

    # Inject some NaNs into the target to exercise the NaN-masking path.
    nan_mask = jax.random.bernoulli(k3, p=0.1, shape=shape)
    y = jnp.where(nan_mask, jnp.nan, y)

    out = mse_loss_nan(x, y)
    out = jax.block_until_ready(out)

    # Reference check in plain JAX.
    ref = y - x
    ref = jnp.where(jnp.isnan(ref), jnp.zeros_like(ref), ref)
    assert out.shape == shape
    assert jnp.allclose(out, ref, atol=1e-6, rtol=1e-6)
    assert not jnp.any(jnp.isnan(out))

    # Exercise the large-tile path (rows > MAX_TILE_ROWS, uneven grid) too.
    big_shape = (3, 4, 128, 257)  # n not a multiple of a full tile
    bx = jax.random.normal(k1, big_shape, dtype=jnp.float32)
    by = jax.random.normal(k2, big_shape, dtype=jnp.float32)
    by = jnp.where(jax.random.bernoulli(k3, p=0.05, shape=big_shape), jnp.nan, by)
    bout = jax.block_until_ready(mse_loss_nan(bx, by))
    bref = by - bx
    bref = jnp.where(jnp.isnan(bref), jnp.zeros_like(bref), bref)
    assert bout.shape == big_shape
    assert jnp.allclose(bout, bref, atol=1e-6, rtol=1e-6)
    assert not jnp.any(jnp.isnan(bout))

    print("KERNEL_OK")
</pallas_src>

<mosaic_0001>
module attributes {stable_mosaic.version = 11 : i64} {
  func.func @_mse_loss_nan_kernel(%arg0: i32, %arg1: memref<16x128xf32, #tpu.memory_space<vmem>>, %arg2: memref<16x128xf32, #tpu.memory_space<vmem>>, %arg3: memref<16x128xf32, #tpu.memory_space<vmem>>) attributes {dimension_semantics = [#tpu.dimension_semantics<parallel>], iteration_bounds = array<i64: 1>, scalar_prefetch = 0 : i64, scratch_operands = 0 : i64, tpu.core_type = #tpu.core_type<tc>, window_params = [{transform_indices = @transform_0, window_bounds = array<i64: 16, 128>}, {transform_indices = @transform_1, window_bounds = array<i64: 16, 128>}, {transform_indices = @transform_2, window_bounds = array<i64: 16, 128>}]} {
    %c0 = arith.constant 0 : index
    %c0_0 = arith.constant 0 : index
    %0 = vector.load %arg2[%c0, %c0_0] : memref<16x128xf32, #tpu.memory_space<vmem>>, vector<16x128xf32>
    %c0_1 = arith.constant 0 : index
    %c0_2 = arith.constant 0 : index
    %1 = vector.load %arg1[%c0_1, %c0_2] : memref<16x128xf32, #tpu.memory_space<vmem>>, vector<16x128xf32>
    %2 = arith.subf %0, %1 : vector<16x128xf32>
    %3 = arith.cmpf one, %2, %2 : vector<16x128xf32>
    %cst = arith.constant 0.000000e+00 : f32
    %4 = vector.broadcast %cst : f32 to vector<16x128xf32>
    %5 = arith.select %3, %4, %2 : vector<16x128xi1>, vector<16x128xf32>
    %c0_3 = arith.constant 0 : index
    %c0_4 = arith.constant 0 : index
    %6 = vector.load %arg3[%c0_3, %c0_4] : memref<16x128xf32, #tpu.memory_space<vmem>>, vector<16x128xf32>
    tpu.vector_store %arg3[%c0_3, %c0_4], %5 {strides = array<i32>} : memref<16x128xf32, #tpu.memory_space<vmem>>, vector<16x128xf32>,
    return
  }
  func.func @transform_0(%arg0: i32) -> (i32, i32) {
    %c0_i32 = arith.constant 0 : i32
    %c0_i32_0 = arith.constant 0 : i32
    return %arg0, %c0_i32 : i32, i32
  }
  func.func @transform_1(%arg0: i32) -> (i32, i32) {
    %c0_i32 = arith.constant 0 : i32
    %c0_i32_0 = arith.constant 0 : i32
    return %arg0, %c0_i32 : i32, i32
  }
  func.func @transform_2(%arg0: i32) -> (i32, i32) {
    %c0_i32 = arith.constant 0 : i32
    %c0_i32_0 = arith.constant 0 : i32
    return %arg0, %c0_i32 : i32, i32
  }
}

</mosaic_0001>

<bundles_post_ra>
// kernel: tpu_custom_call.1
= control target key start
LH: loop header
LB: loop body
LE: loop exit
PB: predicated region body
PF: predicated region fallthrough
CT: control target
= control target key end

     0   :  { %7 = vsyncpa [#allocation3], 0  ;;  %s212_s0 = inlined_call_operand.hbm [shape: f32[16,128], index: 0, kind: input, shape index: {}]   ;;  %s213_s1 = inlined_call_operand.hbm [shape: f32[16,128], index: 1, kind: input, shape index: {}]   ;;  %s214_s2 = inlined_call_operand.hbm [shape: f32[16,128], index: 2, kind: output, shape index: {}]  }
   0x1   :  { %8 = vsyncpa [#allocation6], 0 }
   0x2   :  { %9 = vsyncpa [#allocation4], 0  ;;  %s147_s9 = smov [#allocation2]   ;;  %s75_s13 = scalar_lea.hbm %s212_s0, 256 }
   0x3   :  { %s15_s10 = sshll.u32 %s147_s9, 4  ;;  %p76_p0 = scmp.ne.s32.totalorder %s212_s0, %s75_s13  ;;  %s16_s10 = int_to_ptr.vmem [resolvable:$true] %s15_s10 }
   0x4   :  { %p79_p1 = scmp.lt.u32.totalorder %s75_s13, %s212_s0 }
   0x6   :  { %p81_p2 = pnand %p79_p1, %p76_p0 }
   0x8   :  { %84 = shalt.err (!%p81_p2)
}
   0x9   :  { %s85_s18 = scalar_lea.vmem %s16_s10, 256  ;;  %p90_p4 = scmp.lt.s32.totalorder %s16_s10, %s16_s10 }
   0xa   :  { %p86_p3 = scmp.ne.s32.totalorder %s16_s10, %s85_s18  ;;  %p91_p5 = scmp.lt.s32.totalorder %s85_s18, %s85_s18 }
   0xc   :  { %p92_p6 = por %p91_p5, %p90_p4 }
   0xe   :  { %p93_p7 = pnand %p92_p6, %p86_p3 }
  0x10   :  { %96 = shalt.err (!%p93_p7)
}
  0x11   :  { %s148_s19 = smov 128   ;;  %s149_s20 = smov 8  }
  0x12   :  { %21 = dma.hbm_to_vmem [thread:$0]  %s212_s0, 256, %s16_s10, [#allocation3], %s148_s19, %s148_s19, %s149_s20  }
  0x13   :  { %s150_s23 = smov [#allocation5]   ;;  %s97_s27 = scalar_lea.hbm %s213_s1, 256 }
  0x14   :  { %s27_s24 = sshll.u32 %s150_s23, 4  ;;  %p98_p8 = scmp.ne.s32.totalorder %s213_s1, %s97_s27  ;;  %s28_s24 = int_to_ptr.vmem [resolvable:$true] %s27_s24 }
  0x15   :  { %p101_p9 = scmp.lt.u32.totalorder %s97_s27, %s213_s1 }
  0x17   :  { %p103_p10 = pnand %p101_p9, %p98_p8 }
  0x19   :  { %106 = shalt.err (!%p103_p10)
}
  0x1a   :  { %s107_s4 = scalar_lea.vmem %s28_s24, 256  ;;  %p112_p12 = scmp.lt.s32.totalorder %s28_s24, %s28_s24 }
  0x1b   :  { %p108_p11 = scmp.ne.s32.totalorder %s28_s24, %s107_s4  ;;  %p113_p13 = scmp.lt.s32.totalorder %s107_s4, %s107_s4 }
  0x1d   :  { %p114_p0 = por %p113_p13, %p112_p12 }
  0x1f   :  { %p115_p1 = pnand %p114_p0, %p108_p11 }
  0x21   :  { %118 = shalt.err (!%p115_p1)
}
  0x22   :  { %33 = dma.hbm_to_vmem [thread:$0]  %s213_s1, 256, %s28_s24, [#allocation6], %s148_s19, %s148_s19, %s149_s20  }
  0x23   :  { %141 = dma.done.wait [#allocation3], 256  }
  0x24   :  { %142 = vsyncadd [#allocation3], 4294967040 }
  0x25   :  { %143 = dma.done.wait [#allocation6], 256  }
  0x26   :  { %144 = vsyncadd [#allocation6], 4294967040  ;;  %v40_v0 = vld [vmem:[#allocation5] sm:$0xff]  ;;  %v42_v1 = vld [vmem:[#allocation2] sm:$0xff]  ;;  %s151_s6 = smov [#allocation7]  }
  0x27   :  { %v41_v2 = vld [vmem:[#allocation5 + $0x8] sm:$0xff]  ;;  %v44_v3 = vsub.f32 %v40_v0, %v42_v1  ;;  %v43_v4 = vld [vmem:[#allocation2 + $0x8] sm:$0xff]  ;;  %s57_s7 = sshll.u32 %s151_s6, 4  ;;  %s58_s7 = int_to_ptr.vmem [resolvable:$true] %s57_s7 }
  0x28   :  { %v45_v5 = vsub.f32 %v41_v2, %v43_v4  ;;  %s119_s1 = scalar_lea.vmem %s58_s7, 256  ;;  %p124_p3 = scmp.lt.s32.totalorder %s58_s7, %s58_s7 }
  0x29   :  { %vm46_vm0 = vcmp.ne.f32.partialorder %v44_v3, %v44_v3  ;;  %p120_p2 = scmp.ne.s32.totalorder %s58_s7, %s119_s1  ;;  %p125_p4 = scmp.lt.s32.totalorder %s119_s1, %s119_s1 }
  0x2a   :  { %v48_v6 = vsel %vm46_vm0, 0.0, %v44_v3  ;;  %vm47_vm1 = vcmp.ne.f32.partialorder %v45_v5, %v45_v5 }
  0x2b   :  { %50 = vst [vmem:[#allocation7] sm:$0xff] %v48_v6  ;;  %v49_v7 = vsel %vm47_vm1, 0.0, %v45_v5  ;;  %p126_p5 = por %p125_p4, %p124_p3 }
  0x2c   :  { %51 = vst [vmem:[#allocation7 + $0x8] sm:$0xff] %v49_v7 }
  0x2d   :  { %p127_p6 = pnand %p126_p5, %p120_p2 }
  0x2f   :  { %130 = shalt.err (!%p127_p6)
}
  0x30   :  { %s131_s10 = scalar_lea.hbm %s214_s2, 256 }
  0x31   :  { %p132_p7 = scmp.ne.s32.totalorder %s214_s2, %s131_s10  ;;  %p135_p8 = scmp.lt.u32.totalorder %s131_s10, %s214_s2 }
  0x33   :  { %p137_p9 = pnand %p135_p8, %p132_p7 }
  0x35   :  { %140 = shalt.err (!%p137_p9)
}
  0x36   :  { %63 = dma.vmem_to_hbm [thread:$0]  %s58_s7, 256, %s214_s2, [#allocation4], %s148_s19, %s148_s19, %s149_s20  }
  0x37   :  { %145 = dma.done.wait [#allocation4], 256  }
  0x38   :  { %146 = vsyncadd [#allocation4], 4294967040 }
  0x39   :  { %67 = vsyncpa [#allocation3], 1 }
  0x3a   :  { %68 = vsyncpa [#allocation6], 1 }
  0x3b   :  { %69 = vsyncpa [#allocation4], 1 }

</bundles_post_ra>
